<compile_context>
chip_gen: v7x
topology: tpu7x:2x2x1
jax: 0.10.0
libtpu: 0.0.40
codegen_flags: <defaults>
</compile_context>

<pallas_src>
import functools

import jax
import jax.numpy as jnp
from jax import lax
from jax.experimental import pallas as pl
from jax.experimental.pallas import tpu as pltpu

BN_EPS = 1e-5
NORM_EPS = 1e-12                           # guard for zero-norm rows in cosine denominators
_DOT_LAST = (((1,), (1,)), ((), ()))       # contract last dim of both operands  (A @ B^T)


def _vmem_limit_bytes():
    """Per-generation scoped-VMEM request with headroom (v7x: 64 MiB phys, v5e/v6e: 128)."""
    try:
        cap = int(pltpu.get_tpu_info().vmem_capacity_bytes)
    except Exception:
        cap = 64 * 1024 * 1024
    return max(32 * 1024 * 1024, min(cap * 5 // 8, 100 * 1024 * 1024))


def _pick_tile(n, candidates):
    for c in candidates:
        if n % c == 0:
            return c
    return n  # fallback: whole dim (always layout-legal; may need big VMEM)


# ---------------------------------------------------------------------------
# Stage 1: y = h @ W1^T, accumulate BN1 stats, emit folded (scale, shift)
# ---------------------------------------------------------------------------
def _proj_stats1_kernel(h1_ref, h2_ref, w1_ref, gam_ref, bet_ref, sc1_ref,
                        ssum, ssq, *, n_rows):
    v = pl.program_id(0)
    t = pl.program_id(1)

    @pl.when(t == 0)
    def _():
        ssum[...] = jnp.zeros_like(ssum)
        ssq[...] = jnp.zeros_like(ssq)

    def accum(h_tile):
        y = lax.dot_general(h_tile.astype(jnp.bfloat16), w1_ref[...], _DOT_LAST,
                            preferred_element_type=jnp.float32)       # (tm, H) f32
        ssum[...] += jnp.sum(y, axis=0, keepdims=True)
        ssq[...] += jnp.sum(y * y, axis=0, keepdims=True)

    @pl.when(v == 0)
    def _():
        accum(h1_ref[...])

    @pl.when(v == 1)
    def _():
        accum(h2_ref[...])

    @pl.when(t == pl.num_programs(1) - 1)
    def _():
        inv_n = jnp.float32(1.0 / n_rows)
        mu = ssum[...] * inv_n
        var = ssq[...] * inv_n - mu * mu            # biased variance (training-mode BN)
        rstd = lax.rsqrt(var + BN_EPS)
        scale = rstd * gam_ref[...]                 # fold BN1 affine: y*scale + shift
        shift = bet_ref[...] - mu * scale
        sc1_ref[0:1, :] = scale
        sc1_ref[1:2, :] = shift


# ---------------------------------------------------------------------------
# Stage 2: z = relu(bn1(h @ W1^T)) @ W2^T, store bf16 z, accumulate BN2 stats
# ---------------------------------------------------------------------------
def _proj_z_kernel(h1_ref, h2_ref, sc1_ref, w1_ref, w2_ref,
                   z_ref, s2_ref, ssum, ssq, *, n_rows):
    v = pl.program_id(0)
    t = pl.program_id(1)

    @pl.when(t == 0)
    def _():
        ssum[...] = jnp.zeros_like(ssum)
        ssq[...] = jnp.zeros_like(ssq)

    def emit(h_tile):
        y = lax.dot_general(h_tile.astype(jnp.bfloat16), w1_ref[...], _DOT_LAST,
                            preferred_element_type=jnp.float32)       # (tm, H) f32
        y = y * sc1_ref[0:1, :] + sc1_ref[1:2, :]                     # folded BN1
        y = jnp.maximum(y, 0.0)                                       # ReLU
        z = lax.dot_general(y.astype(jnp.bfloat16), w2_ref[...], _DOT_LAST,
                            preferred_element_type=jnp.float32)       # (tm, H) f32
        z_ref[...] = z.astype(jnp.bfloat16)                           # bf16 z to HBM
        ssum[...] += jnp.sum(z, axis=0, keepdims=True)
        ssq[...] += jnp.sum(z * z, axis=0, keepdims=True)

    @pl.when(v == 0)
    def _():
        emit(h1_ref[...])

    @pl.when(v == 1)
    def _():
        emit(h2_ref[...])

    @pl.when(t == pl.num_programs(1) - 1)
    def _():
        inv_n = jnp.float32(1.0 / n_rows)
        mu = ssum[...] * inv_n
        var = ssq[...] * inv_n - mu * mu
        s2_ref[0:1, :] = mu
        s2_ref[1:2, :] = lax.rsqrt(var + BN_EPS)


def project_both(h1f, h2f, w1, w2, gamma, beta, *, row_tile=None, vmem_limit=None):
    """h1f/h2f: (N, H) per-view activations. Returns bf16 z (2, N, H) and BN2 stats (2, 2, H)."""
    n, hdim = h1f.shape
    tm = row_tile or _pick_tile(n, (1024, 512, 256, 128, 64, 32, 16))
    nt = n // tm
    vmem_limit = vmem_limit or _vmem_limit_bytes()

    w1b = w1.astype(jnp.bfloat16)
    w2b = w2.astype(jnp.bfloat16)

    cparams = pltpu.CompilerParams(
        dimension_semantics=("parallel", "arbitrary"),   # views on megacore, rows = reduction
        vmem_limit_bytes=vmem_limit)

    # Inactive view's block stays pinned at 0 -> no per-step re-DMA, no jnp.stack copy.
    h1_spec = pl.BlockSpec((tm, hdim), lambda v, t: (t * (1 - v), 0))
    h2_spec = pl.BlockSpec((tm, hdim), lambda v, t: (t * v, 0))
    w_spec = pl.BlockSpec((hdim, hdim), lambda v, t: (0, 0))        # weights stay resident
    vec_spec = pl.BlockSpec((1, hdim), lambda v, t: (0, 0))
    stats_spec = pl.BlockSpec((None, 2, hdim), lambda v, t: (v, 0, 0))
    z_spec = pl.BlockSpec((None, tm, hdim), lambda v, t: (v, t, 0))

    sc1 = pl.pallas_call(
        functools.partial(_proj_stats1_kernel, n_rows=n),
        out_shape=jax.ShapeDtypeStruct((2, 2, hdim), jnp.float32),
        grid_spec=pltpu.PrefetchScalarGridSpec(
            num_scalar_prefetch=0, grid=(2, nt),
            in_specs=[h1_spec, h2_spec, w_spec, vec_spec, vec_spec],
            out_specs=stats_spec,
            scratch_shapes=[pltpu.VMEM((1, hdim), jnp.float32),
                            pltpu.VMEM((1, hdim), jnp.float32)]),
        compiler_params=cparams,
    )(h1f, h2f, w1b, gamma, beta)

    z_raw, stats2 = pl.pallas_call(
        functools.partial(_proj_z_kernel, n_rows=n),
        out_shape=(jax.ShapeDtypeStruct((2, n, hdim), jnp.bfloat16),
                   jax.ShapeDtypeStruct((2, 2, hdim), jnp.float32)),
        grid_spec=pltpu.PrefetchScalarGridSpec(
            num_scalar_prefetch=0, grid=(2, nt),
            in_specs=[h1_spec, h2_spec, stats_spec, w_spec, w_spec],
            out_specs=(z_spec, stats_spec),
            scratch_shapes=[pltpu.VMEM((1, hdim), jnp.float32),
                            pltpu.VMEM((1, hdim), jnp.float32)]),
        compiler_params=cparams,
    )(h1f, h2f, sc1, w1b, w2b)

    return z_raw, stats2


# ---------------------------------------------------------------------------
# Stage 3: fused BN2-normalize + stacked (2b,2b) Gram over D tiles + NT-Xent epilogue
# ---------------------------------------------------------------------------
def _ntxent_kernel(z_ref, m1_ref, r1_ref, m2_ref, r2_ref, loss_ref,
                   gram, *, temperature, batch):
    k = pl.program_id(0)
    b2 = 2 * batch

    @pl.when(k == 0)
    def _():
        gram[...] = jnp.zeros_like(gram)

    # fused BatchNorm1d(affine=False): rows [0,b) use view-1 stats, rows [b,2b) view-2
    row = lax.broadcasted_iota(jnp.int32, z_ref.shape, 0)
    m = jnp.where(row < batch, m1_ref[...], m2_ref[...])
    r = jnp.where(row < batch, r1_ref[...], r2_ref[...])
    zn = ((z_ref[...].astype(jnp.float32) - m) * r).astype(jnp.bfloat16)
    gram[...] += lax.dot_general(zn, zn, _DOT_LAST,
                                 preferred_element_type=jnp.float32)   # (2b, 2b) f32

    @pl.when(k == pl.num_programs(0) - 1)
    def _():
        G = gram[...]
        inv_t = jnp.float32(1.0 / temperature)
        r_idx = lax.broadcasted_iota(jnp.int32, (b2, b2), 0)
        c_idx = lax.broadcasted_iota(jnp.int32, (b2, b2), 1)
        eye = r_idx == c_idx
        # positive pair for row i sits at column i +/- b  (== sim12 / sim12^T diagonals)
        pos_mask = jnp.logical_or(c_idx == r_idx + batch, c_idx == r_idx - batch)

        # squared row norms = Gram diagonal (column- and row-oriented; no transpose)
        diag_c = jnp.sum(jnp.where(eye, G, 0.0), axis=1, keepdims=True)   # (2b, 1)
        diag_r = jnp.sum(jnp.where(eye, G, 0.0), axis=0, keepdims=True)   # (1, 2b)
        S = (G * lax.rsqrt(jnp.maximum(diag_c, NORM_EPS))
               * lax.rsqrt(jnp.maximum(diag_r, NORM_EPS))) * inv_t        # cosine / T

        pos = jnp.sum(jnp.where(pos_mask, S, 0.0), axis=1, keepdims=True)  # target logits
        Sm = jnp.where(eye, -jnp.inf, S)                # self-similarity excluded
        mrow = jnp.max(Sm, axis=1, keepdims=True)
        lse = mrow + jnp.log(jnp.sum(jnp.exp(Sm - mrow), axis=1, keepdims=True))

        total = jnp.sum(lse - pos, axis=0, keepdims=True)                 # (1, 1)
        loss_ref[...] = total * jnp.float32(1.0 / b2)


def ntxent_from_z(z_stacked, m1, r1, m2, r2, *, temperature, d_tile=None, vmem_limit=None):
    """z_stacked: (2b, d) bf16 (views stacked along rows). Stats: (1, d) f32 each."""
    b2, d = z_stacked.shape
    batch = b2 // 2
    tk = d_tile or _pick_tile(d, (8192, 4096, 2048, 1024, 512, 256, 128))
    nk = d // tk
    vmem_limit = vmem_limit or _vmem_limit_bytes()

    z_spec = pl.BlockSpec((b2, tk), lambda k: (0, k))
    s_spec = pl.BlockSpec((1, tk), lambda k: (0, k))

    # TODO(synk): on v7x the D reduction could be split across the two TensorCores
    # (partial Grams + tiny reduce/epilogue kernel); single 'arbitrary' axis for now.
    loss = pl.pallas_call(
        functools.partial(_ntxent_kernel, temperature=temperature, batch=batch),
        out_shape=jax.ShapeDtypeStruct((1, 1), jnp.float32),
        grid_spec=pltpu.PrefetchScalarGridSpec(
            num_scalar_prefetch=0, grid=(nk,),
            in_specs=[z_spec, s_spec, s_spec, s_spec, s_spec],
            out_specs=pl.BlockSpec((1, 1), lambda k: (0, 0)),
            scratch_shapes=[pltpu.VMEM((b2, b2), jnp.float32)]),
        compiler_params=pltpu.CompilerParams(
            dimension_semantics=("arbitrary",),          # D is a reduction axis
            vmem_limit_bytes=vmem_limit),
    )(z_stacked, m1, r1, m2, r2)
    return loss[0, 0]


# ---------------------------------------------------------------------------
# Full forward (wrapper glue: reshapes / stat tiling only)
# ---------------------------------------------------------------------------
def ntxent_loss(h1, h2, w1, w2, gamma, beta, *, temperature=1.0,
                projectionhead=True, row_tile=None, d_tile=None):
    b, seq_len, hidden = h1.shape
    d = seq_len * hidden
    if projectionhead:
        h1f = h1.reshape(b * seq_len, hidden)
        h2f = h2.reshape(b * seq_len, hidden)
        z_raw, stats2 = project_both(h1f, h2f, w1, w2, gamma, beta, row_tile=row_tile)
        # (2, b*L, H) -> (2b, L*H): pure contiguous reshape (H stays fastest-varying).
        z_stacked = z_raw.reshape(2 * b, d)
        # Tile per-H BN2 stats along L to line up with the (2b, L*H) view of z; the
        # normalization itself is fused into the Gram kernel (no extra z round trip).
        m1 = jnp.tile(stats2[0, 0:1, :], (1, seq_len))
        r1 = jnp.tile(stats2[0, 1:2, :], (1, seq_len))
        m2 = jnp.tile(stats2[1, 0:1, :], (1, seq_len))
        r2 = jnp.tile(stats2[1, 1:2, :], (1, seq_len))
    else:
        z_stacked = jnp.concatenate([h1.reshape(b, d), h2.reshape(b, d)],
                                    axis=0).astype(jnp.bfloat16)
        m1 = m2 = jnp.zeros((1, d), jnp.float32)
        r1 = r2 = jnp.ones((1, d), jnp.float32)
    # TODO(synk): only the default calcsim='cosine' path is implemented ('dot' unused here).
    return ntxent_from_z(z_stacked, m1, r1, m2, r2, temperature=temperature, d_tile=d_tile)


# ---------------------------------------------------------------------------
# Pure-JAX f32 reference (for correctness check)
# ---------------------------------------------------------------------------
def ref_ntxent_loss(h1, h2, w1, w2, gamma, beta, temperature=1.0):
    def proj(h):
        x = h.reshape(-1, h.shape[-1]).astype(jnp.float32)
        y = x @ w1.T
        mu, var = y.mean(0), ((y - y.mean(0)) ** 2).mean(0)
        y = (y - mu) / jnp.sqrt(var + BN_EPS) * gamma[0] + beta[0]
        y = jnp.maximum(y, 0.0)
        z = y @ w2.T
        mu2, var2 = z.mean(0), ((z - z.mean(0)) ** 2).mean(0)
        return (z - mu2) / jnp.sqrt(var2 + BN_EPS)

    b = h1.shape[0]
    z1 = proj(h1).reshape(b, -1)
    z2 = proj(h2).reshape(b, -1)

    def cosine(a, c):
        s = a @ c.T
        return s / (jnp.linalg.norm(a, axis=-1, keepdims=True)
                    @ jnp.linalg.norm(c, axis=-1, keepdims=True).T)

    sim11 = cosine(z1, z1) / temperature
    sim22 = cosine(z2, z2) / temperature
    sim12 = cosine(z1, z2) / temperature
    eye = jnp.eye(b, dtype=bool)
    sim11 = jnp.where(eye, -jnp.inf, sim11)
    sim22 = jnp.where(eye, -jnp.inf, sim22)
    top = jnp.concatenate([sim12, sim11], axis=-1)
    bot = jnp.concatenate([sim22, sim12.T], axis=-1)
    scores = jnp.concatenate([top, bot], axis=0)
    tgt = jnp.arange(2 * b)
    lse = jax.scipy.special.logsumexp(scores, axis=-1)
    return jnp.mean(lse - scores[tgt, tgt])


if __name__ == "__main__":
    # small, module-consistent shapes: batch=2, bert_max_len=16, bert_hidden_units=32
    B, L, H = 2, 16, 32
    temperature = 1.0

    key = jax.random.PRNGKey(0)
    k1, k2, k3, k4 = jax.random.split(key, 4)
    h1 = jax.random.normal(k1, (B, L, H), dtype=jnp.float32)
    h2 = jax.random.normal(k2, (B, L, H), dtype=jnp.float32)

    # deterministic params (PyTorch Linear: U(-1/sqrt(H), 1/sqrt(H)); BN: gamma=1, beta=0)
    bound = 1.0 / (H ** 0.5)
    w1 = jax.random.uniform(k3, (H, H), minval=-bound, maxval=bound, dtype=jnp.float32)
    w2 = jax.random.uniform(k4, (H, H), minval=-bound, maxval=bound, dtype=jnp.float32)
    gamma = jnp.ones((1, H), dtype=jnp.float32)
    beta = jnp.zeros((1, H), dtype=jnp.float32)

    # tiles chosen to exercise multi-step grids (row_tile=16 -> 2 row tiles per view,
    # d_tile=256 -> 2 reduction steps in the Gram/LSE stage) while respecting bf16 tiling
    loss = ntxent_loss(h1, h2, w1, w2, gamma, beta,
                       temperature=temperature, row_tile=16, d_tile=256)
    loss = jax.block_until_ready(loss)

    ref = ref_ntxent_loss(h1, h2, w1, w2, gamma, beta, temperature=temperature)
    # bf16 MXU operands + bf16 z storage vs. the f32 reference -> looser tolerance
    assert jnp.allclose(loss, ref, rtol=5e-2, atol=5e-2), (loss, ref)

    print("KERNEL_OK")
</pallas_src>

<mosaic_0001>
module attributes {stable_mosaic.version = 11 : i64} {
  func.func @_proj_stats1_kernel(%arg0: i32, %arg1: i32, %arg2: memref<16x32xf32, #tpu.memory_space<vmem>>, %arg3: memref<16x32xf32, #tpu.memory_space<vmem>>, %arg4: memref<32x32xbf16, #tpu.memory_space<vmem>>, %arg5: memref<1x32xf32, #tpu.memory_space<vmem>>, %arg6: memref<1x32xf32, #tpu.memory_space<vmem>>, %arg7: memref<1x2x32xf32, #tpu.memory_space<vmem>>, %arg8: memref<1x32xf32, #tpu.memory_space<vmem>>, %arg9: memref<1x32xf32, #tpu.memory_space<vmem>>) attributes {dimension_semantics = [#tpu.dimension_semantics<parallel>, #tpu.dimension_semantics<arbitrary>], iteration_bounds = array<i64: 2, 2>, scalar_prefetch = 0 : i64, scratch_operands = 2 : i64, tpu.core_type = #tpu.core_type<tc>, window_params = [{transform_indices = @transform_0, window_bounds = array<i64: 16, 32>}, {transform_indices = @transform_1, window_bounds = array<i64: 16, 32>}, {pipeline_mode = #tpu.pipeline_mode<synchronous>, transform_indices = @transform_2, window_bounds = array<i64: 32, 32>}, {pipeline_mode = #tpu.pipeline_mode<synchronous>, transform_indices = @transform_3, window_bounds = array<i64: 1, 32>}, {pipeline_mode = #tpu.pipeline_mode<synchronous>, transform_indices = @transform_4, window_bounds = array<i64: 1, 32>}, {transform_indices = @transform_5, window_bounds = array<i64: 1, 2, 32>}]} {
    %c0_i32 = arith.constant 0 : i32
    %0 = arith.cmpi eq, %arg1, %c0_i32 : i32
    %1 = arith.extui %0 : i1 to i32
    %c0_i32_0 = arith.constant 0 : i32
    %2 = arith.cmpi ne, %1, %c0_i32_0 : i32
    scf.if %2 {
      %cst = arith.constant 0.000000e+00 : f32
      %12 = vector.broadcast %cst : f32 to vector<1x32xf32>
      %c0 = arith.constant 0 : index
      %c0_6 = arith.constant 0 : index
      %13 = vector.load %arg8[%c0, %c0_6] : memref<1x32xf32, #tpu.memory_space<vmem>>, vector<1x32xf32>
      tpu.vector_store %arg8[%c0, %c0_6], %12 {strides = array<i32>} : memref<1x32xf32, #tpu.memory_space<vmem>>, vector<1x32xf32>,
      %cst_7 = arith.constant 0.000000e+00 : f32
      %14 = vector.broadcast %cst_7 : f32 to vector<1x32xf32>
      %c0_8 = arith.constant 0 : index
      %c0_9 = arith.constant 0 : index
      %15 = vector.load %arg9[%c0_8, %c0_9] : memref<1x32xf32, #tpu.memory_space<vmem>>, vector<1x32xf32>
      tpu.vector_store %arg9[%c0_8, %c0_9], %14 {strides = array<i32>} : memref<1x32xf32, #tpu.memory_space<vmem>>, vector<1x32xf32>,
    } else {
    }
    %c0_i32_1 = arith.constant 0 : i32
    %3 = arith.cmpi eq, %arg0, %c0_i32_1 : i32
    %4 = arith.extui %3 : i1 to i32
    %c0_i32_2 = arith.constant 0 : i32
    %5 = arith.cmpi ne, %4, %c0_i32_2 : i32
    scf.if %5 {
      %c0 = arith.constant 0 : index
      %c0_6 = arith.constant 0 : index
      %12 = vector.load %arg2[%c0, %c0_6] : memref<16x32xf32, #tpu.memory_space<vmem>>, vector<16x32xf32>
      %13 = arith.truncf %12 : vector<16x32xf32> to vector<16x32xbf16>
      %c0_7 = arith.constant 0 : index
      %c0_8 = arith.constant 0 : index
      %14 = vector.load %arg4[%c0_7, %c0_8] : memref<32x32xbf16, #tpu.memory_space<vmem>>, vector<32x32xbf16>
      %cst = arith.constant dense<0.000000e+00> : vector<16x32xf32>
      %15 = tpu.matmul %13, %14, %cst {dimension_numbers = #tpu.dot_dimension_numbers<[1], [1], [0], [0], [0, 0, 1, 0], [], []>} : vector<16x32xbf16>, vector<32x32xbf16>, vector<16x32xf32> -> vector<16x32xf32>
      %c0_9 = arith.constant 0 : index
      %c0_10 = arith.constant 0 : index
      %16 = vector.load %arg8[%c0_9, %c0_10] : memref<1x32xf32, #tpu.memory_space<vmem>>, vector<1x32xf32>
      %cst_11 = arith.constant dense<0.000000e+00> : vector<32xf32>
      %17 = vector.multi_reduction <add>, %15, %cst_11 [0] : vector<16x32xf32> to vector<32xf32>
      %18 = vector.shape_cast %17 : vector<32xf32> to vector<1x32xf32>
      %19 = arith.addf %16, %18 : vector<1x32xf32>
      %c0_12 = arith.constant 0 : index
      %c0_13 = arith.constant 0 : index
      %20 = vector.load %arg8[%c0_12, %c0_13] : memref<1x32xf32, #tpu.memory_space<vmem>>, vector<1x32xf32>
      tpu.vector_store %arg8[%c0_12, %c0_13], %19 {strides = array<i32>} : memref<1x32xf32, #tpu.memory_space<vmem>>, vector<1x32xf32>,
      %c0_14 = arith.constant 0 : index
      %c0_15 = arith.constant 0 : index
      %21 = vector.load %arg9[%c0_14, %c0_15] : memref<1x32xf32, #tpu.memory_space<vmem>>, vector<1x32xf32>
      %22 = arith.mulf %15, %15 : vector<16x32xf32>
      %cst_16 = arith.constant dense<0.000000e+00> : vector<32xf32>
      %23 = vector.multi_reduction <add>, %22, %cst_16 [0] : vector<16x32xf32> to vector<32xf32>
      %24 = vector.shape_cast %23 : vector<32xf32> to vector<1x32xf32>
      %25 = arith.addf %21, %24 : vector<1x32xf32>
      %c0_17 = arith.constant 0 : index
      %c0_18 = arith.constant 0 : index
      %26 = vector.load %arg9[%c0_17, %c0_18] : memref<1x32xf32, #tpu.memory_space<vmem>>, vector<1x32xf32>
      tpu.vector_store %arg9[%c0_17, %c0_18], %25 {strides = array<i32>} : memref<1x32xf32, #tpu.memory_space<vmem>>, vector<1x32xf32>,
    } else {
    }
    %c1_i32 = arith.constant 1 : i32
    %6 = arith.cmpi eq, %arg0, %c1_i32 : i32
    %7 = arith.extui %6 : i1 to i32
    %c0_i32_3 = arith.constant 0 : i32
    %8 = arith.cmpi ne, %7, %c0_i32_3 : i32
    scf.if %8 {
      %c0 = arith.constant 0 : index
      %c0_6 = arith.constant 0 : index
      %12 = vector.load %arg3[%c0, %c0_6] : memref<16x32xf32, #tpu.memory_space<vmem>>, vector<16x32xf32>
      %13 = arith.truncf %12 : vector<16x32xf32> to vector<16x32xbf16>
      %c0_7 = arith.constant 0 : index
      %c0_8 = arith.constant 0 : index
      %14 = vector.load %arg4[%c0_7, %c0_8] : memref<32x32xbf16, #tpu.memory_space<vmem>>, vector<32x32xbf16>
      %cst = arith.constant dense<0.000000e+00> : vector<16x32xf32>
      %15 = tpu.matmul %13, %14, %cst {dimension_numbers = #tpu.dot_dimension_numbers<[1], [1], [0], [0], [0, 0, 1, 0], [], []>} : vector<16x32xbf16>, vector<32x32xbf16>, vector<16x32xf32> -> vector<16x32xf32>
      %c0_9 = arith.constant 0 : index
      %c0_10 = arith.constant 0 : index
      %16 = vector.load %arg8[%c0_9, %c0_10] : memref<1x32xf32, #tpu.memory_space<vmem>>, vector<1x32xf32>
      %cst_11 = arith.constant dense<0.000000e+00> : vector<32xf32>
      %17 = vector.multi_reduction <add>, %15, %cst_11 [0] : vector<16x32xf32> to vector<32xf32>
      %18 = vector.shape_cast %17 : vector<32xf32> to vector<1x32xf32>
      %19 = arith.addf %16, %18 : vector<1x32xf32>
      %c0_12 = arith.constant 0 : index
      %c0_13 = arith.constant 0 : index
      %20 = vector.load %arg8[%c0_12, %c0_13] : memref<1x32xf32, #tpu.memory_space<vmem>>, vector<1x32xf32>
      tpu.vector_store %arg8[%c0_12, %c0_13], %19 {strides = array<i32>} : memref<1x32xf32, #tpu.memory_space<vmem>>, vector<1x32xf32>,
      %c0_14 = arith.constant 0 : index
      %c0_15 = arith.constant 0 : index
      %21 = vector.load %arg9[%c0_14, %c0_15] : memref<1x32xf32, #tpu.memory_space<vmem>>, vector<1x32xf32>
      %22 = arith.mulf %15, %15 : vector<16x32xf32>
      %cst_16 = arith.constant dense<0.000000e+00> : vector<32xf32>
      %23 = vector.multi_reduction <add>, %22, %cst_16 [0] : vector<16x32xf32> to vector<32xf32>
      %24 = vector.shape_cast %23 : vector<32xf32> to vector<1x32xf32>
      %25 = arith.addf %21, %24 : vector<1x32xf32>
      %c0_17 = arith.constant 0 : index
      %c0_18 = arith.constant 0 : index
      %26 = vector.load %arg9[%c0_17, %c0_18] : memref<1x32xf32, #tpu.memory_space<vmem>>, vector<1x32xf32>
      tpu.vector_store %arg9[%c0_17, %c0_18], %25 {strides = array<i32>} : memref<1x32xf32, #tpu.memory_space<vmem>>, vector<1x32xf32>,
    } else {
    }
    %c1_i32_4 = arith.constant 1 : i32
    %9 = arith.cmpi eq, %arg1, %c1_i32_4 : i32
    %10 = arith.extui %9 : i1 to i32
    %c0_i32_5 = arith.constant 0 : i32
    %11 = arith.cmpi ne, %10, %c0_i32_5 : i32
    scf.if %11 {
      %c0 = arith.constant 0 : index
      %c0_6 = arith.constant 0 : index
      %12 = vector.load %arg8[%c0, %c0_6] : memref<1x32xf32, #tpu.memory_space<vmem>>, vector<1x32xf32>
      %cst = arith.constant 3.125000e-02 : f32
      %13 = vector.broadcast %cst : f32 to vector<1x32xf32>
      %14 = arith.mulf %12, %13 : vector<1x32xf32>
      %c0_7 = arith.constant 0 : index
      %c0_8 = arith.constant 0 : index
      %15 = vector.load %arg9[%c0_7, %c0_8] : memref<1x32xf32, #tpu.memory_space<vmem>>, vector<1x32xf32>
      %cst_9 = arith.constant 3.125000e-02 : f32
      %16 = vector.broadcast %cst_9 : f32 to vector<1x32xf32>
      %17 = arith.mulf %15, %16 : vector<1x32xf32>
      %18 = arith.mulf %14, %14 : vector<1x32xf32>
      %19 = arith.subf %17, %18 : vector<1x32xf32>
      %cst_10 = arith.constant 9.99999974E-6 : f32
      %20 = vector.broadcast %cst_10 : f32 to vector<1x32xf32>
      %21 = arith.addf %19, %20 : vector<1x32xf32>
      %22 = math.rsqrt %21 : vector<1x32xf32>
      %c0_11 = arith.constant 0 : index
      %c0_12 = arith.constant 0 : index
      %23 = vector.load %arg5[%c0_11, %c0_12] : memref<1x32xf32, #tpu.memory_space<vmem>>, vector<1x32xf32>
      %24 = arith.mulf %22, %23 : vector<1x32xf32>
      %c0_13 = arith.constant 0 : index
      %c0_14 = arith.constant 0 : index
      %25 = vector.load %arg6[%c0_13, %c0_14] : memref<1x32xf32, #tpu.memory_space<vmem>>, vector<1x32xf32>
      %26 = arith.mulf %14, %24 : vector<1x32xf32>
      %27 = arith.subf %25, %26 : vector<1x32xf32>
      %c0_15 = arith.constant 0 : index
      %c0_16 = arith.constant 0 : index
      %c0_17 = arith.constant 0 : index
      %28 = vector.load %arg7[%c0_15, %c0_16, %c0_17] : memref<1x2x32xf32, #tpu.memory_space<vmem>>, vector<1x1x32xf32>
      %29 = vector.shape_cast %28 : vector<1x1x32xf32> to vector<1x32xf32>
      %30 = vector.shape_cast %24 : vector<1x32xf32> to vector<1x1x32xf32>
      tpu.vector_store %arg7[%c0_15, %c0_16, %c0_17], %30 {strides = array<i32>} : memref<1x2x32xf32, #tpu.memory_space<vmem>>, vector<1x1x32xf32>,
      %c0_18 = arith.constant 0 : index
      %c1 = arith.constant 1 : index
      %c0_19 = arith.constant 0 : index
      %31 = vector.load %arg7[%c0_18, %c1, %c0_19] : memref<1x2x32xf32, #tpu.memory_space<vmem>>, vector<1x1x32xf32>
      %32 = vector.shape_cast %31 : vector<1x1x32xf32> to vector<1x32xf32>
      %33 = vector.shape_cast %27 : vector<1x32xf32> to vector<1x1x32xf32>
      tpu.vector_store %arg7[%c0_18, %c1, %c0_19], %33 {strides = array<i32>} : memref<1x2x32xf32, #tpu.memory_space<vmem>>, vector<1x1x32xf32>,
    } else {
    }
    return
  }
  func.func @transform_0(%arg0: i32, %arg1: i32) -> (i32, i32) {
    %c1_i32 = arith.constant 1 : i32
    %0 = arith.subi %c1_i32, %arg0 : i32
    %1 = arith.muli %arg1, %0 : i32
    %c0_i32 = arith.constant 0 : i32
    %c0_i32_0 = arith.constant 0 : i32
    return %1, %c0_i32 : i32, i32
  }
  func.func @transform_1(%arg0: i32, %arg1: i32) -> (i32, i32) {
    %0 = arith.muli %arg1, %arg0 : i32
    %c0_i32 = arith.constant 0 : i32
    %c0_i32_0 = arith.constant 0 : i32
    return %0, %c0_i32 : i32, i32
  }
  func.func @transform_2(%arg0: i32, %arg1: i32) -> (i32, i32) {
    %c0_i32 = arith.constant 0 : i32
    %c0_i32_0 = arith.constant 0 : i32
    %c0_i32_1 = arith.constant 0 : i32
    return %c0_i32, %c0_i32_0 : i32, i32
  }
  func.func @transform_3(%arg0: i32, %arg1: i32) -> (i32, i32) {
    %c0_i32 = arith.constant 0 : i32
    %c0_i32_0 = arith.constant 0 : i32
    %c0_i32_1 = arith.constant 0 : i32
    return %c0_i32, %c0_i32_0 : i32, i32
  }
  func.func @transform_4(%arg0: i32, %arg1: i32) -> (i32, i32) {
    %c0_i32 = arith.constant 0 : i32
    %c0_i32_0 = arith.constant 0 : i32
    %c0_i32_1 = arith.constant 0 : i32
    return %c0_i32, %c0_i32_0 : i32, i32
  }
  func.func @transform_5(%arg0: i32, %arg1: i32) -> (i32, i32, i32) {
    %c0_i32 = arith.constant 0 : i32
    %c0_i32_0 = arith.constant 0 : i32
    %c0_i32_1 = arith.constant 0 : i32
    return %arg0, %c0_i32, %c0_i32_0 : i32, i32, i32
  }
}

</mosaic_0001>

<bundles_post_ra>
// kernel: tpu_custom_call.1
= control target key start
LH: loop header
LB: loop body
LE: loop exit
PB: predicated region body
PF: predicated region fallthrough
CT: control target
= control target key end

     0   :  { %s1580_s0 = inlined_call_operand.hbm [shape: f32[32,32], index: 0, kind: input, shape index: {}]   ;;  %s1581_s1 = inlined_call_operand.hbm [shape: f32[32,32], index: 1, kind: input, shape index: {}]   ;;  %s1582_s2 = inlined_call_operand.hbm [shape: bf16[32,32], index: 2, kind: input, shape index: {}]   ;;  %s1583_s3 = inlined_call_operand.vmem [shape: f32[1,32], index: 3, kind: input, shape index: {}]   ;;  %s1584_s4 = inlined_call_operand.vmem [shape: f32[1,32], index: 4, kind: input, shape index: {}]   ;;  %s1585_s5 = inlined_call_operand.hbm [shape: f32[2,2,32], index: 5, kind: output, shape index: {}]  }
   0x1   :  { %1602 = sst [smem:[#allocation24_spill]] %s1580_s0 }
   0x2   :  { %1603 = sst [smem:[#allocation25_spill]] %s1582_s2 }
   0x3   :  { %1604 = sst [smem:[#allocation26_spill]] %s1583_s3 }
   0x4   :  { %1605 = sst [smem:[#allocation27_spill]] %s1584_s4 }
   0x5   :  { %1606 = sst [smem:[#allocation28_spill]] %s1585_s5 }
   0x6   :  { %10 = vsyncpa [#allocation5], 0 }
   0x7   :  { %12 = vsyncpa [#allocation5 + $0x1], 0 }
   0x8   :  { %13 = vsyncpa [#allocation8], 0 }
   0x9   :  { %15 = vsyncpa [#allocation8 + $0x1], 0 }
   0xa   :  { %16 = vsyncpa [#allocation6], 0 }
   0xb   :  { %18 = vsyncpa [#allocation6 + $0x1], 0  ;;  %s1174_s18 = smov 0   ;;  %s1176_s19 = smov 0  }
   0xc   :  { %s1178_s20 = smov 0   ;;  %s1180_s21 = smov 0  }
   0xd   :  { %s1182_s22 = smov 0   ;;  %s1184_s23 = smov 0  }
   0xe   :  { %s1186_s24 = smov 0   ;;  %s1188_s25 = smov 0  }
   0xf   :  { %s1190_s26 = smov 0   ;;  %s1192_s27 = smov 0  }
  0x10   :  { %s1194_s28 = smov 0   ;;  %s1196_s29 = smov 0  }
  0x11   :  { %s1198_s30 = smov 0   ;;  %s1200_s6 = smov 0  }
  0x12 LB: > { %1607 = sst [smem:[#allocation15_spill]] %s1077_s18  ;;  %s1241_s7 = sadd.s32 4294967295, %s1129_s6   ;;  %s1129_s6 = sphi %s1200_s6, %s24_s6   ;;  %s1125_s30 = sphi %s1198_s30, %s1667_s30   ;;  %s1121_s29 = sphi %s1196_s29, %s1666_s29   ;;  %s1117_s28 = sphi %s1194_s28, %s1665_s28   ;;  %s1113_s27 = sphi %s1192_s27, %s1664_s27   ;;  %s1109_s26 = sphi %s1190_s26, %s1654_s26   ;;  %s1105_s25 = sphi %s1188_s25, %s1663_s25   ;;  %s1101_s24 = sphi %s1186_s24, %s1662_s24   ;;  %s1097_s23 = sphi %s1184_s23, %s1661_s23   ;;  %s1093_s22 = sphi %s1182_s22, %s1660_s22   ;;  %s1089_s21 = sphi %s1180_s21, %s1659_s21   ;;  %s1085_s20 = sphi %s1178_s20, %s1658_s20   ;;  %s1081_s19 = sphi %s1176_s19, %s1657_s19   ;;  %s1077_s18 = sphi %s1174_s18, %s1651_s18  }
  0x13   : > { %1608 = sst [smem:[#allocation16_spill]] %s1081_s19  ;;  %s677_s8 = sadd.s32 4294967294, %s1129_s6  }
  0x14   : > { %1609 = sst [smem:[#allocation17_spill]] %s1109_s26  ;;  %p60_p0 = scmp.ne.s32.totalorder %s1105_s25, %s1101_s24 }
  0x15   : > { %1610 = sst [smem:[#allocation18_spill]] %s1113_s27  ;;  %p1589_p1 = scmp.eq.s32.totalorder %s1241_s7, 0 }
  0x16   : > { %1611 = sst [smem:[#allocation19_spill]] %s1117_s28  ;;  %p88_p2 = scmp.ne.s32.totalorder %s1093_s22, %s1089_s21 }
  0x17   : > { %p1250_p3 = por %p1589_p1, %p60_p0  ;;  %p174_p4 = scmp.ne.s32.totalorder %s1085_s20, %s1081_s19 }
  0x18   : > { %p1258_p5 = por %p88_p2, %p1589_p1  ;;  %p175_p6 = scmp.eq.s32.totalorder %s1241_s7, 3 }
  0x19   : > { %s1612_s10 = scalar_select %p1250_p3, 1, 0 }
  0x1a   : > { %s1613_s11 = scalar_select %p1258_p5, 1, 0 }
  0x1b   : > { %p180_p7 = scmp.ne.s32.totalorder %s1081_s19, %s1077_s18  ;;  %p181_p8 = scmp.eq.s32.totalorder %s677_s8, 3 }
  0x1c   : > { %1614 = sst [smem:[#allocation20_spill]] %s1613_s11  ;;  %p1265_p9 = por %p175_p6, %p174_p4 }
  0x1d   : > { %p678_p10 = scmp.ge.s32.totalorder %s1129_s6, 1  ;;  %p1270_p11 = por %p181_p8, %p180_p7 }
  0x1e   : > { %s1615_s12 = scalar_select %p1265_p9, 1, 0 }
  0x1f   : > { %s1617_s13 = scalar_select %p1270_p11, 1, 0 }
  0x20   : > { %1616 = sst [smem:[#allocation21_spill]] %s1615_s12  ;;  %p188_p12 = scmp.lt.s32.totalorder %s1129_s6, 5 }
  0x21   : > { %1618 = sst [smem:[#allocation22_spill]] %s1617_s13  ;;  %s1131_s15 = smov [#allocation9]  }
  0x22   : > { %p1275_p13 = pnand %p678_p10, %p188_p12  ;;  %s200_s16 = sshll.u32 %s1131_s15, 4  ;;  %s201_s16 = int_to_ptr.vmem [resolvable:$true] %s200_s16 }
  0x23   : > { %s1621_s2 = sld [smem:[#allocation25_spill]] }
  0x24   : > { %s1619_s14 = scalar_select %p1275_p13, 1, 0 }
  0x25   : > { %p740_p0 = pneg %p1275_p13 }
  0x27   : > { %p1283_p2 = pnand %p740_p0, %p1589_p1 }
  0x29   : > { %s887_s8 = scalar_lea.hbm %s1621_s2, 256  ;;  %p889_p6 = pneg %p1283_p2 }
  0x2a   : > { %p888_p4 = scmp.ne.s32.totalorder %s1621_s2, %s887_s8  ;;  %p894_p10 = scmp.lt.u32.totalorder %s887_s8, %s1621_s2 }
  0x2c   : > { %p890_p7 = pnand %p889_p6, %p888_p4 }
  0x2e   : > { %p891_p8 = pneg %p890_p7 }
  0x30   : > { %p896_p12 = pnand %p894_p10, %p891_p8 }
  0x32   : > { %899 = shalt.err (!%p896_p12)
}
  0x33   : > { %s900_s5 = scalar_lea.vmem %s201_s16, 256  ;;  %p908_p9 = scmp.lt.s32.totalorder %s201_s16, %s201_s16 }
  0x34   : > { %p901_p0 = scmp.ne.s32.totalorder %s201_s16, %s900_s5  ;;  %p909_p5 = scmp.lt.s32.totalorder %s900_s5, %s900_s5 }
  0x36   : > { %p903_p1 = pnand %p901_p0, %p889_p6  ;;  %p910_p3 = por %p909_p5, %p908_p9 }
  0x38   : > { %p904_p11 = pneg %p903_p1 }
  0x3a   : > { %p911_p13 = pnand %p910_p3, %p904_p11 }
  0x3c   : > { %914 = shalt.err (!%p911_p13)
}
  0x3d   : > { %s1132_s9 = smov 64   ;;  %s1133_s18 = smov 4  }
  0x3e   : > { %743 = dma.hbm_to_vmem [thread:$0]  (!%p1283_p2), %s1621_s2, 256, %s201_s16, [#allocation8], %s1132_s9, %s1132_s9, %s1133_s18  }
  0x3f   : > { %s33_s21 = sadd.s32 1, %s1121_s29  ;;  %s36_s24 = sadd.s32 1, %s1125_s30 }
  0x40   : > { %p34_p1 = scmp.ge.s32.totalorder %s33_s21, 2  ;;  %s40_s8 = ssub.s32 1, %s1125_s30 }
  0x41   : > { %s47_s15 = sadd.s32 1, %s1109_s26  ;;  %s41_s12 = smul.u32 %s1121_s29, %s40_s8 }
  0x42   : > { %s1669_s21 = smov (%p34_p1, %s33_s21), 0  ;;  %s1671_s24 = smov (!%p34_p1, %s36_s24), %s1125_s30 }
  0x43   : > { %p54_p3 = scmp.ne.s32.totalorder %s1109_s26, %s1105_s25  ;;  %p38_p5 = scmp.ge.s32.totalorder %s1671_s24, 2 }
  0x44   : > { %p55_p9 = scmp.eq.s32.totalorder %s1129_s6, 0  ;;  %p1600_p11 = scmp.lt.s32.totalorder %s1129_s6, 4 }
  0x45   : > { %s220_s17 = sand.u32 1, %s1109_s26   ;;  %s1673_s24 = smov (%p38_p5, %s1671_s24), 0 }
  0x46   : > { %p1320_p13 = por %p55_p9, %p54_p3  ;;  %s42_s9 = ssub.s32 1, %s1673_s24 }
  0x47   : > { %s161_s18 = ssub.s32 %s1125_s30, %s1673_s24  ;;  %s43_s13 = smul.u32 %s42_s9, %s1669_s21 }
  0x48   : > { %p162_p2 = scmp.eq.s32.totalorder %s161_s18, 0  ;;  %s681_s5 = sshll.u32 %s220_s17, 4 }
  0x49   : > { %s706_s8 = sshll.u32 %s41_s12, 8  ;;  %s44_s2 = ssub.s32 %s41_s12, %s43_s13 }
  0x4a   : > { %p45_p4 = scmp.eq.s32.totalorder %s44_s2, 0  ;;  %s1623_s0 = sld [smem:[#allocation24_spill]] }
  0x4b   : > { %s1624_s27 = sadd.s32 1, %s1085_s20  ;;  %s224_s9 = scalar_lea.vmem [#allocation4], %s681_s5 }
  0x4c   : > { %s1336_s19 = scalar_select %p162_p2, %s1085_s20, %s1624_s27  }
  0x4d   : > { %s1339_s11 = scalar_select %p45_p4, %s1109_s26, %s47_s15  }
  0x4e   : > { %s233_s18 = sshll.u32 %s224_s9, 4  ;;  %p1345_p6 = pnand %p1600_p11, %p1320_p13  ;;  %s1349_s18 = int_to_ptr.vmem [resolvable:$true] %s233_s18 }
  0x4f   : > { %1625 = sst [smem:[#allocation23_spill]] %s1339_s11  ;;  %s1351_s3 = scalar_lea.sflag [#allocation5], %s220_s17 }
  0x50   : > { %s1331_s28 = scalar_lea.hbm %s1623_s0, %s706_s8  ;;  %p917_p8 = pneg %p1345_p6 }
  0x51   : > { %s915_s4 = scalar_lea.hbm %s1331_s28, 256  ;;  %s920_s15 = scalar_lea.hbm %s1623_s0, 512 }
  0x52   : > { %p916_p7 = scmp.ne.s32.totalorder %s1331_s28, %s915_s4  ;;  %p921_p0 = scmp.lt.u32.totalorder %s1331_s28, %s1623_s0 }
  0x53   : > { %p922_p1 = scmp.lt.u32.totalorder %s920_s15, %s915_s4  ;;  %p924_p5 = scmp.lt.u32.totalorder %s915_s4, %s1331_s28 }
  0x54   : > { %p918_p10 = pnand %p917_p8, %p916_p7 }
  0x55   : > { %p923_p3 = por %p922_p1, %p921_p0 }
  0x56   : > { %p919_p12 = pneg %p918_p10 }
  0x57   : > { %p925_p13 = por %p924_p5, %p923_p3 }
  0x59   : > { %p926_p2 = pnand %p925_p13, %p919_p12 }
  0x5b   : > { %929 = shalt.err (!%p926_p2)
}
  0x5c   : > { %s930_s17 = scalar_lea.vmem %s1349_s18, 256  ;;  %s1134_s5 = smov [#allocation4]  }
  0x5d   : > { %p931_p4 = scmp.ne.s32.totalorder %s1349_s18, %s930_s17  ;;  %s935_s8 = sshll.u32 %s1134_s5, 4  ;;  %s936_s8 = int_to_ptr.vmem [resolvable:$false] %s935_s8 }
  0x5e   : > { %s937_s9 = scalar_lea.vmem %s936_s8, 512  ;;  %p938_p11 = scmp.lt.s32.totalorder %s1349_s18, %s936_s8 }
  0x5f   : > { %p933_p7 = pnand %p931_p4, %p917_p8  ;;  %p939_p0 = scmp.lt.s32.totalorder %s937_s9, %s930_s17 }
  0x61   : > { %p934_p10 = pneg %p933_p7  ;;  %p940_p1 = por %p939_p0, %p938_p11 }
  0x63   : > { %p941_p3 = pnand %p940_p1, %p934_p10 }
  0x65   : > { %944 = shalt.err (!%p941_p3)
}
  0x66   : > { %s1135_s4 = smov 128   ;;  %s1136_s27 = smov 8  }
  0x67   : > { %747 = dma.hbm_to_vmem [thread:$0]  (!%p1345_p6), %s1331_s28, 256, %s1349_s18, %s1351_s3, %s1135_s4, %s1135_s4, %s1136_s27  }
  0x68   : > { %s70_s12 = smul.u32 %s1121_s29, %s1125_s30  ;;  %s75_s16 = sadd.s32 1, %s1097_s23 }
  0x69   : > { %s71_s15 = smul.u32 %s1673_s24, %s1669_s21  ;;  %p82_p11 = scmp.ne.s32.totalorder %s1097_s23, %s1093_s22 }
  0x6a   : > { %s243_s17 = sand.u32 1, %s1129_s6   ;;  %s245_s5 = sand.u32 1, %s1097_s23  }
  0x6b   : > { %s72_s13 = ssub.s32 %s70_s12, %s71_s15  ;;  %p84_p12 = por %p82_p11, %p55_p9 }
  0x6c   : > { %p73_p8 = scmp.eq.s32.totalorder %s72_s13, 0  ;;  %s684_s9 = sshll.u32 %s245_s5, 4 }
  0x6d   : > { %s707_s0 = sshll.u32 %s70_s12, 8  ;;  %s247_s28 = scalar_lea.vmem [#allocation7], %s684_s9 }
  0x6e   : > { %s1394_s8 = scalar_select %p73_p8, %s1097_s23, %s75_s16  }
  0x6f   : > { %s1399_s26 = scalar_lea.hbm %s1581_s1, %s707_s0  ;;  %s255_s18 = sshll.u32 %s247_s28, 4  ;;  %s1407_s18 = int_to_ptr.vmem [resolvable:$true] %s255_s18 }
  0x70   : > { %p1627_p6 = scmp.lt.s32.totalorder %s1129_s6, 4  ;;  %s1409_s12 = scalar_lea.sflag [#allocation8], %s243_s17 }
  0x71   : > { %s945_s11 = scalar_lea.hbm %s1399_s26, 256  ;;  %s950_s16 = scalar_lea.hbm %s1581_s1, 512 }
  0x72   : > { %p1403_p5 = pnand %p1627_p6, %p84_p12  ;;  %p946_p9 = scmp.ne.s32.totalorder %s1399_s26, %s945_s11 }
  0x73   : > { %p951_p7 = scmp.lt.u32.totalorder %s1399_s26, %s1581_s1  ;;  %p952_p10 = scmp.lt.u32.totalorder %s950_s16, %s945_s11 }
  0x74   : > { %p947_p13 = pneg %p1403_p5  ;;  %p954_p1 = scmp.lt.u32.totalorder %s945_s11, %s1399_s26 }
  0x75   : > { %p953_p0 = por %p952_p10, %p951_p7 }
  0x76   : > { %p948_p2 = pnand %p947_p13, %p946_p9 }
  0x77   : > { %p955_p3 = por %p954_p1, %p953_p0 }
  0x78   : > { %p949_p4 = pneg %p948_p2 }
  0x7a   : > { %p956_p11 = pnand %p955_p3, %p949_p4 }
  0x7c   : > { %959 = shalt.err (!%p956_p11)
}
  0x7d   : > { %s960_s17 = scalar_lea.vmem %s1407_s18, 256  ;;  %s1137_s9 = smov [#allocation7]  }
  0x7e   : > { %p961_p8 = scmp.ne.s32.totalorder %s1407_s18, %s960_s17  ;;  %s965_s2 = sshll.u32 %s1137_s9, 4  ;;  %s966_s2 = int_to_ptr.vmem [resolvable:$false] %s965_s2 }
  0x7f   : > { %s967_s28 = scalar_lea.vmem %s966_s2, 512  ;;  %p968_p9 = scmp.lt.s32.totalorder %s1407_s18, %s966_s2 }
  0x80   : > { %p963_p12 = pnand %p961_p8, %p947_p13  ;;  %p969_p2 = scmp.lt.s32.totalorder %s967_s28, %s960_s17 }
  0x82   : > { %p964_p6 = pneg %p963_p12  ;;  %p970_p7 = por %p969_p2, %p968_p9 }
  0x84   : > { %p971_p10 = pnand %p970_p7, %p964_p6 }
  0x86   : > { %974 = shalt.err (!%p971_p10)
}
  0x87   : > { %750 = dma.hbm_to_vmem [thread:$0]  (!%p1403_p5), %s1399_s26, 256, %s1407_s18, %s1409_s12, %s1135_s4, %s1135_s4, %s1136_s27  }
  0x88   : > { %p1629_p13 = scmp.ne.s32.totalorder %s1619_s14, 0 }
  0x89   : > { %s269_s11 = sand.u32 (!%p1629_p13), 1, %s1105_s25   ;;  %p1630_p4 = scmp.ne.s32.totalorder (!%p1629_p13), %s1612_s10, 0 }
  0x8a   : > { %267 = sbr.rel (%p1629_p13) target bundleno = 750 (0x2ee), region = 40  ;;  %s1443_s0 = sshll.u32 (!%p1629_p13), %s269_s11, 4 }
  0x8b   : > { %s270_s15 = scalar_lea.sflag (!%p1629_p13), [#allocation5], %s269_s11  ;;  %s273_s16 = scalar_lea.vmem (!%p1629_p13), [#allocation4], %s1443_s0 }
  0x91   : > { %1060 = dma.done.wait (%p1630_p4), %s270_s15, 256  }
  0x92   : > { %1062 = vsyncadd (%p1630_p4), %s270_s15, 4294967040  ;;  %s1631_s3 = sld [smem:[#allocation20_spill]]  ;;  %s278_s26 = sand.u32 1, %s1241_s7  }
  0x93   : > { %s280_s4 = sand.u32 1, %s1093_s22   ;;  %s279_s27 = scalar_lea.sflag [#allocation8], %s278_s26 }
  0x94   : > { %s1452_s14 = sshll.u32 %s280_s4, 4 }
  0x95   : > { %s282_s18 = scalar_lea.vmem [#allocation7], %s1452_s14 }
  0x98   : > { %p1632_p5 = scmp.ne.s32.totalorder %s1631_s3, 0 }
  0x9a   : > { %1064 = dma.done.wait (%p1632_p5), %s279_s27, 256  }
  0x9b   : > { %1066 = vsyncadd (%p1632_p5), %s279_s27, 4294967040  ;;  %p1633_p0 = scmp.eq.s32.totalorder %s1241_s7, 0 }
  0x9d   : > { %1068 = dma.done.wait (%p1633_p0), [#allocation8], 256   ;;  %p1634_p1 = pmov %p1633_p0 }
  0x9e   : > { %s1635_s10 = sld [smem:[#allocation16_spill]]  ;;  %s1636_s17 = sld [smem:[#allocation18_spill]] }
  0x9f   : > { %1070 = vsyncadd (%p1634_p1), [#allocation8], 4294967040 }
  0xa4   : > { %s315_s12 = sand.u32 1, %s1635_s10   ;;  %p692_p3 = scmp.ne.s32.totalorder %s1636_s17, 0 }
  0xa5   : > { %s691_s13 = sshll.u32 %s315_s12, 1  ;;  %vm328_vm0 = vcmask (!%p692_p3), 253952   ;;  %v1138_v0 = vmov (!%p692_p3), 0.0  }
  0xa6   : > { %s1466_s5 = scalar_lea.vmem [#allocation10], %s691_s13  ;;  %327 = sbr.rel (%p692_p3) target bundleno = 173 (0xad), region = 56  ;;  %329 = vst.msk [vmem:[#allocation2] sm:$0x1] (!%p692_p3), %vm328_vm0, %v1138_v0  ;;  %330 = vst.msk [vmem:[#allocation3] sm:$0x1] (!%p692_p3), %vm328_vm0, %v1138_v0 }
  0xad PF: > { %s1637_s9 = sld [smem:[#allocation19_spill]] }
  0xb3   : > { %p693_p11 = scmp.ne.s32.totalorder %s1637_s9, 0 }
  0xb4   : > { %v881_v1 = vld [vmem:[#allocation9] sm:$0xff] (!%p693_p11)   ;;  %v1139_v2 = vmov (!%p693_p11), 0.0   ;;  %vm352_vm1 = vcmask (!%p693_p11), 261120   ;;  %vm1140_vm2 = vmmov (!%p693_p11), 0   ;;  %v882_v4 = vld [vmem:[#allocation9 + $0x8] sm:$0xff] (!%p693_p11)   ;;  %vm414_vm3 = vcmask (!%p693_p11), 253952  }
  0xb5   : > { %334 = sbr.rel (%p693_p11) target bundleno = 431 (0x1af), region = 60  ;;  %714 = vmatprep.subr.bf16.mxu0 (!%p693_p11), %v1139_v2  ;;  %v357_v3 = vsel (!%p693_p11), %vm352_vm1, %v881_v1, 0  ;;  %718 = vmatprep.mubr.msk.bf16.mxu0 (!%p693_p11), %vm1140_vm2, %v1139_v2  ;;  %v360_v5 = vsel (!%p693_p11), %vm352_vm1, %v882_v4, 0  ;;  %v335_v6 = vld [vmem:[%s273_s16] sm:$0xff] (!%p693_p11)  ;;  %v336_v7 = vld [vmem:[%s273_s16 + $0x8] sm:$0xff] (!%p693_p11) }
  0xb6   : > { %715 = vmatpush3.bf16.xpose.msra.mxu0 (!%p693_p11), %v357_v3  ;;  %v337_v8 = vpack.c.bf16 (!%p693_p11), %v336_v7, %v335_v6  ;;  %v403_v30 = vld [vmem:[#allocation2] sm:$0x1] (!%p693_p11)  ;;  %v416_v33 = vld [vmem:[#allocation3] sm:$0x1] (!%p693_p11) }
  0xb7   : > { %716 = vmatprep.subr.bf16.mxu0 (!%p693_p11), %v1139_v2 }
  0xbe   : > { %717 = vmatpush3.bf16.xpose.msra.mxu0 %v360_v5 }
  0xc5   : > { %719 = vmatmul.mubr.msk.bf16.vlgmr.msra.gmra.mrb[0].mxu0 %vm352_vm1, %v337_v8 }
 0x198   : > { %v396_v9 = vpop.f32.mrb[0].mxu0 }
 0x199   : > { %v417_v10 = vmul.f32 %v396_v9, %v396_v9  ;;  %v720_v11 = vpop.f32.mrb[1].mxu0  ;;  %v404_v13 = vsel %vm352_vm1, %v396_v9, 0.0 }
 0x19a   : > { %v399_v12 = vpop.f32.mrb[2].mxu0 }
 0x19b   : > { %v405_v14 = vsel %vm352_vm1, %v399_v12, 0.0  ;;  %v418_v15 = vmul.f32 %v399_v12, %v399_v12  ;;  %v721_v16 = vpop.f32.mrb[3].mxu0  ;;  %v419_v18 = vsel %vm352_vm1, %v417_v10, 0.0 }
 0x19c   : > { %v406_v17 = vadd.f32 %v405_v14, %v404_v13 }
 0x19d   : > { %v420_v19 = vsel %vm352_vm1, %v418_v15, 0.0 }
 0x19e   : > { %v407_v20 = vrot.slane %v406_v17, 4  ;;  %v421_v21 = vadd.f32 %v420_v19, %v419_v18 }
 0x1a0   : > { %v408_v22 = vadd.f32 %v407_v20, %v406_v17  ;;  %v422_v23 = vrot.slane %v421_v21, 4 }
 0x1a2   : > { %v409_v24 = vrot.slane %v408_v22, 2  ;;  %v423_v25 = vadd.f32 %v422_v23, %v421_v21 }
 0x1a4   : > { %v410_v26 = vadd.f32 %v409_v24, %v408_v22  ;;  %v424_v27 = vrot.slane %v423_v25, 2 }
 0x1a6   : > { %v411_v28 = vrot.slane %v410_v26, 1  ;;  %v425_v29 = vadd.f32 %v424_v27, %v423_v25 }
 0x1a8   : > { %v412_v31 = vadd.f32 %v411_v28, %v410_v26  ;;  %v426_v32 = vrot.slane %v425_v29, 1 }
 0x1aa   : > { %v413_v34 = vadd.f32 %v412_v31, %v403_v30  ;;  %v427_v35 = vadd.f32 %v426_v32, %v425_v29 }
 0x1ac   : > { %415 = vst.msk [vmem:[#allocation2] sm:$0x1] %vm414_vm3, %v413_v34  ;;  %v428_v36 = vadd.f32 %v427_v35, %v416_v33 }
 0x1ae   : > { %429 = vst.msk [vmem:[#allocation3] sm:$0x1] %vm414_vm3, %v428_v36 }
 0x1af PF: > { %s1638_s7 = sld [smem:[#allocation19_spill]] }
 0x1b5   : > { %p697_p8 = scmp.ne.s32.totalorder %s1638_s7, 1 }
 0x1b6   : > { %v883_v37 = vld [vmem:[#allocation9] sm:$0xff] (!%p697_p8)   ;;  %v1141_v38 = vmov (!%p697_p8), 0.0   ;;  %vm451_vm4 = vcmask (!%p697_p8), 261120   ;;  %vm1142_vm5 = vmmov (!%p697_p8), 0   ;;  %v884_v40 = vld [vmem:[#allocation9 + $0x8] sm:$0xff] (!%p697_p8)   ;;  %vm513_vm6 = vcmask (!%p697_p8), 253952  }
 0x1b7   : > { %433 = sbr.rel (%p697_p8) target bundleno = 689 (0x2b1), region = 64  ;;  %722 = vmatprep.subr.bf16.mxu0 (!%p697_p8), %v1141_v38  ;;  %v456_v39 = vsel (!%p697_p8), %vm451_vm4, %v883_v37, 0  ;;  %726 = vmatprep.mubr.msk.bf16.mxu0 (!%p697_p8), %vm1142_vm5, %v1141_v38  ;;  %v459_v41 = vsel (!%p697_p8), %vm451_vm4, %v884_v40, 0  ;;  %v434_v42 = vld [vmem:[%s282_s18] sm:$0xff] (!%p697_p8)  ;;  %v435_v43 = vld [vmem:[%s282_s18 + $0x8] sm:$0xff] (!%p697_p8) }
 0x1b8   : > { %723 = vmatpush3.bf16.xpose.msra.mxu0 (!%p697_p8), %v456_v39  ;;  %v436_v44 = vpack.c.bf16 (!%p697_p8), %v435_v43, %v434_v42  ;;  %v502_v2 = vld [vmem:[#allocation2] sm:$0x1] (!%p697_p8)  ;;  %v515_v5 = vld [vmem:[#allocation3] sm:$0x1] (!%p697_p8) }
 0x1b9   : > { %724 = vmatprep.subr.bf16.mxu0 (!%p697_p8), %v1141_v38 }
 0x1c0   : > { %725 = vmatpush3.bf16.xpose.msra.mxu0 %v459_v41 }
 0x1c7   : > { %727 = vmatmul.mubr.msk.bf16.vlgmr.msra.gmra.mrb[0].mxu0 %vm451_vm4, %v436_v44 }
 0x29a   : > { %v495_v45 = vpop.f32.mrb[0].mxu0 }
 0x29b   : > { %v516_v46 = vmul.f32 %v495_v45, %v495_v45  ;;  %v728_v47 = vpop.f32.mrb[1].mxu0  ;;  %v503_v49 = vsel %vm451_vm4, %v495_v45, 0.0 }
 0x29c   : > { %v498_v48 = vpop.f32.mrb[2].mxu0 }
 0x29d   : > { %v504_v50 = vsel %vm451_vm4, %v498_v48, 0.0  ;;  %v517_v51 = vmul.f32 %v498_v48, %v498_v48  ;;  %v729_v52 = vpop.f32.mrb[3].mxu0  ;;  %v518_v54 = vsel %vm451_vm4, %v516_v46, 0.0 }
 0x29e   : > { %v505_v53 = vadd.f32 %v504_v50, %v503_v49 }
 0x29f   : > { %v519_v55 = vsel %vm451_vm4, %v517_v51, 0.0 }
 0x2a0   : > { %v506_v56 = vrot.slane %v505_v53, 4  ;;  %v520_v57 = vadd.f32 %v519_v55, %v518_v54 }
 0x2a2   : > { %v507_v58 = vadd.f32 %v506_v56, %v505_v53  ;;  %v521_v59 = vrot.slane %v520_v57, 4 }
 0x2a4   : > { %v508_v60 = vrot.slane %v507_v58, 2  ;;  %v522_v61 = vadd.f32 %v521_v59, %v520_v57 }
 0x2a6   : > { %v509_v62 = vadd.f32 %v508_v60, %v507_v58  ;;  %v523_v63 = vrot.slane %v522_v61, 2 }
 0x2a8   : > { %v510_v0 = vrot.slane %v509_v62, 1  ;;  %v524_v1 = vadd.f32 %v523_v63, %v522_v61 }
 0x2aa   : > { %v511_v3 = vadd.f32 %v510_v0, %v509_v62  ;;  %v525_v4 = vrot.slane %v524_v1, 1 }
 0x2ac   : > { %v512_v6 = vadd.f32 %v511_v3, %v502_v2  ;;  %v526_v7 = vadd.f32 %v525_v4, %v524_v1 }
 0x2ae   : > { %514 = vst.msk [vmem:[#allocation2] sm:$0x1] %vm513_vm6, %v512_v6  ;;  %v527_v8 = vadd.f32 %v526_v7, %v515_v5 }
 0x2b0   : > { %528 = vst.msk [vmem:[#allocation3] sm:$0x1] %vm513_vm6, %v527_v8 }
 0x2b1 PF: > { %s1639_s2 = sld [smem:[#allocation18_spill]] }
 0x2b7   : > { %p701_p12 = scmp.ne.s32.totalorder %s1639_s2, 1 }
 0x2b8   : > { %v533_v9 = vld [vmem:[#allocation2] sm:$0x1] (!%p701_p12)  ;;  %v535_v10 = vld [vmem:[#allocation3] sm:$0x1] (!%p701_p12)  ;;  %s1640_s0 = sld [smem:[#allocation26_spill]] (!%p701_p12)  ;;  %vm546_vm7 = vcmask (!%p701_p12), 253952  }
 0x2b9   : > { %532 = sbr.rel (%p701_p12) target bundleno = 723 (0x2d3), region = 68  ;;  %v534_v11 = vmul.f32 (!%p701_p12), 0.03125, %v533_v9  ;;  %v536_v12 = vmul.f32 (!%p701_p12), 0.03125, %v535_v10  ;;  %s1641_s3 = sld [smem:[#allocation27_spill]] (!%p701_p12) }
 0x2bb   : > { %v537_v13 = vmul.f32 (!%p701_p12), %v534_v11, %v534_v11 }
 0x2bd   : > { %v538_v14 = vsub.f32 (!%p701_p12), %v536_v12, %v537_v13 }
 0x2be   : > { %v541_v16 = vld [vmem:[%s1640_s0] sm:$0x1] (!%p701_p12) }
 0x2bf   : > { %v539_v15 = vadd.f32 (!%p701_p12), 1e-05, %v538_v14  ;;  %v543_v19 = vld [vmem:[%s1641_s3] sm:$0x1] (!%p701_p12) }
 0x2c1   : > { %885 = vrsqrt.f32 %v539_v15 }
 0x2cb   : > { %v886_v17 = vpop.eup %885 }
 0x2cc   : > { %v542_v18 = vmul.f32 %v886_v17, %v541_v16 }
 0x2ce   : > { %547 = vst.msk [vmem:[%s1466_s5] sm:$0x1] %vm546_vm7, %v542_v18  ;;  %v544_v20 = vmul.f32 %v542_v18, %v534_v11 }
 0x2d0   : > { %v545_v21 = vsub.f32 %v543_v19, %v544_v20 }
 0x2d2   : > { %548 = vst.msk [vmem:[%s1466_s5 + $0x1] sm:$0x1] %vm546_vm7, %v545_v21 }
 0x2d3 PF: > { %s1642_s26 = sld [smem:[#allocation19_spill]]  ;;  %s1644_s14 = sld [smem:[#allocation21_spill]] }
 0x2d4   : > { %s1645_s13 = sld [smem:[#allocation28_spill]]  ;;  %s563_s9 = sshll.u32 %s1466_s5, 4  ;;  %s564_s9 = int_to_ptr.vmem [resolvable:$true] %s563_s9 }
 0x2d5   : > { %s550_s7 = scalar_lea.sflag [#allocation6], %s315_s12  ;;  %s975_s2 = scalar_lea.vmem %s564_s9, 32 }
 0x2d6   : > { %p976_p6 = scmp.ne.s32.totalorder %s564_s9, %s975_s2  ;;  %s1143_s28 = smov [#allocation10]  }
 0x2d7   : > { %s979_s11 = sshll.u32 %s1143_s28, 4  ;;  %s980_s11 = int_to_ptr.vmem [resolvable:$false] %s979_s11 }
 0x2d8   : > { %s981_s0 = scalar_lea.vmem %s980_s11, 64  ;;  %p982_p10 = scmp.lt.s32.totalorder %s564_s9, %s980_s11 }
 0x2d9   : > { %s703_s27 = sshll.u32 %s1642_s26, 5  ;;  %p1646_p9 = scmp.ne.s32.totalorder %s1644_s14, 0 }
 0x2da   : > { %s1506_s17 = scalar_lea.hbm %s1645_s13, %s703_s27  ;;  %p983_p13 = scmp.lt.s32.totalorder %s981_s0, %s975_s2 }
 0x2db   : > { %p977_p2 = pnand %p976_p6, %p1646_p9 }
 0x2dc   : > { %p984_p4 = por %p983_p13, %p982_p10 }
 0x2dd   : > { %p978_p7 = pneg %p977_p2 }
 0x2df   : > { %p985_p5 = pnand %p984_p4, %p978_p7 }
 0x2e1   : > { %988 = shalt.err (!%p985_p5)
}
 0x2e2   : > { %s989_s12 = scalar_lea.hbm %s1506_s17, 32  ;;  %s993_s16 = scalar_lea.hbm %s1645_s13, 64 }
 0x2e3   : > { %p990_p0 = scmp.ne.s32.totalorder %s1506_s17, %s989_s12  ;;  %p994_p11 = scmp.lt.u32.totalorder %s1506_s17, %s1645_s13 }
 0x2e4   : > { %p995_p8 = scmp.lt.u32.totalorder %s993_s16, %s989_s12  ;;  %p997_p6 = scmp.lt.u32.totalorder %s989_s12, %s1506_s17 }
 0x2e5   : > { %p991_p1 = pnand %p990_p0, %p1646_p9 }
 0x2e6   : > { %p996_p12 = por %p995_p8, %p994_p11 }
 0x2e7   : > { %p992_p3 = pneg %p991_p1 }
 0x2e8   : > { %p998_p2 = por %p997_p6, %p996_p12 }
 0x2ea   : > { %p999_p7 = pnand %p998_p2, %p992_p3 }
 0x2ec   : > { %1002 = shalt.err (!%p999_p7)
}
 0x2ed   : > { %738 = dma.vmem_to_hbm [thread:$0]  (%p1646_p9), %s564_s9, 32, %s1506_s17, %s550_s7  }
 0x2ee PF: > { %s1647_s4 = sld [smem:[#allocation15_spill]]  ;;  %s1648_s27 = sld [smem:[#allocation22_spill]] }
 0x2ef   : > { %p758_p10 = scmp.ge.s32.totalorder %s1129_s6, 2 }
 0x2f4   : > { %s575_s18 = sand.u32 1, %s1647_s4   ;;  %p1649_p13 = scmp.ne.s32.totalorder %s1648_s27, 0 }
 0x2f5   : > { %s576_s10 = scalar_lea.sflag [#allocation6], %s575_s18 }
 0x2f6   : > { %p752_p4 = pnand %p758_p10, %p1649_p13 }
 0x2f8   : > { %1072 = dma.done.wait (!%p752_p4), %s576_s10, 32  }
 0x2f9   : > { %1074 = vsyncadd (!%p752_p4), %s576_s10, 4294967264  ;;  %s24_s6 = sadd.s32 1, %s1129_s6   ;;  %s1651_s18 = sld [smem:[#allocation16_spill]] }
 0x2fa   : > { %p1533_p5 = scmp.ge.s32.totalorder %s24_s6, 6   ;;  %s1652_s14 = smov %s1336_s19 }
 0x2fb   : > { %s1653_s17 = sld [smem:[#allocation17_spill]]  ;;  %s1654_s26 = sld [smem:[#allocation23_spill]] }
 0x2fc   : > { %s1655_s9 = smov %s1669_s21  ;;  %s1656_s7 = smov %s1673_s24 }
 0x2fd   : > { %s1657_s19 = smov %s1085_s20  ;;  %s1658_s20 = smov %s1652_s14 }
 0x2fe   : > { %s1659_s21 = smov %s1093_s22  ;;  %s1660_s22 = smov %s1097_s23 }
 0x2ff   : > { %s1661_s23 = smov %s1394_s8  ;;  %s1662_s24 = smov %s1105_s25 }
 0x300   : > { %s1664_s27 = smov %s1121_s29  ;;  %s1665_s28 = smov %s1125_s30 }
 0x301   : > { %s1663_s25 = smov %s1653_s17  ;;  %s1666_s29 = smov %s1655_s9 }
 0x302   : > { %s1667_s30 = smov %s1656_s7  ;;  %23 = sbr.rel (!%p1533_p5) target bundleno = 18 (0x12), region = 118 }
 0x309   :  { %581 = vsyncpa [#allocation5], 1 }
 0x30a   :  { %583 = vsyncpa [#allocation5 + $0x1], 1 }
 0x30b   :  { %584 = vsyncpa [#allocation8], 1 }
 0x30c   :  { %586 = vsyncpa [#allocation8 + $0x1], 1 }
 0x30d   :  { %587 = vsyncpa [#allocation6], 1 }
 0x30e   :  { %589 = vsyncpa [#allocation6 + $0x1], 1 }

</bundles_post_ra>
